<compile_context>
chip_gen: v7x
topology: tpu7x:2x2x1
jax: 0.10.0
libtpu: 0.0.40
codegen_flags: <defaults>
</compile_context>

<pallas_src>
from functools import partial

import jax
import jax.numpy as jnp
from jax import lax
from jax.experimental import pallas as pl
from jax.experimental.pallas import tpu as pltpu


def _cosplace_kernel(p_ref, x_ref, w_ref, b_ref, o_ref, acc_ref, *, hw_total):
    # p_ref:   SMEM (1,)           -- GeM power p
    # x_ref:   VMEM (tb, C, thw)   -- input features, channels on sublanes
    # w_ref:   VMEM (C, OUT_P)     -- fc weight (transposed, lane-padded)
    # b_ref:   VMEM (1, OUT_P)     -- fc bias (lane-padded)
    # o_ref:   VMEM (tb, OUT_P)    -- output descriptor (lane-padded)
    # acc_ref: VMEM (tb, C) f32    -- streaming GeM accumulator (sum of xc**p)
    hw_i = pl.program_id(1)

    @pl.when(hw_i == 0)
    def _():
        acc_ref[...] = jnp.zeros_like(acc_ref)

    p = p_ref[0]
    x = x_ref[...].astype(jnp.float32)                       # (tb, C, thw)

    # F.normalize(x, p=2, dim=channel): rsqrt + multiply instead of divide.
    ssq = jnp.sum(x * x, axis=1, keepdims=True)               # (tb, 1, thw)
    inv = lax.rsqrt(jnp.maximum(ssq, 1e-24))                  # == 1/max(||x||,1e-12)
    xc = jnp.maximum(x * inv, 1e-6)                           # GeM clamp(min=eps)

    # Streamed GeM numerator: accumulate sum over this HW tile of xc**p.
    acc_ref[...] += jnp.sum(jnp.exp(p * jnp.log(xc)), axis=-1)  # (tb, C)

    @pl.when(hw_i == pl.num_programs(1) - 1)
    def _():
        pooled = acc_ref[...] * (1.0 / hw_total)              # spatial mean
        g = jnp.exp(jnp.log(pooled) / p)                      # ** (1/p), pooled > 0
        y = jnp.dot(g, w_ref[...],
                    preferred_element_type=jnp.float32) + b_ref[...]
        ysq = jnp.sum(y * y, axis=-1, keepdims=True)
        o_ref[...] = (y * lax.rsqrt(jnp.maximum(ysq, 1e-24))).astype(o_ref.dtype)


def cosplace_forward(x_nchw, p, fc_w, fc_b, *, hw_tile_bytes_cap=8 * 1024 * 1024):
    """x_nchw: (B, C, H, W); p: (1,); fc_w: (OUT, C) torch-style; fc_b: (OUT,)."""
    B, C, H, W = x_nchw.shape
    OUT = fc_w.shape[0]
    HW = H * W

    # NCHW -> (B, C, HW): pure reshape, no extra HBM relayout pass.
    x_bchw = x_nchw.reshape(B, C, HW)

    # Lane-dense FC / output: pad OUT up to a multiple of 128 with zeros
    # (zero columns + zero bias leave the final L2 norm unchanged).
    OUT_P = ((OUT + 127) // 128) * 128
    w_co = jnp.zeros((C, OUT_P), jnp.float32).at[:, :OUT].set(
        jnp.transpose(fc_w).astype(jnp.float32))
    b_1o = jnp.zeros((1, OUT_P), jnp.float32).at[:, :OUT].set(
        fc_b.astype(jnp.float32))
    p_s = p.astype(jnp.float32)

    # Batch tile: multiple of 8 if it divides B, otherwise the full batch
    # (keeps the (tb, OUT_P) output block legal).
    tb = 8 if (B % 8 == 0) else B

    # HW tile: largest multiple of 128 that divides HW, under the byte cap,
    # keeping >=2 HW steps when possible so DMA/compute can overlap.
    if HW % 128 == 0:
        candidates = [t for t in range(128, HW + 1, 128) if HW % t == 0]
        viable = [t for t in candidates
                  if tb * C * t * 4 <= hw_tile_bytes_cap
                  and (t < HW or len(candidates) == 1)]
        thw = max(viable) if viable else 128
    else:
        thw = HW  # full-extent block is always legal

    grid = (B // tb, HW // thw)

    out_p = pl.pallas_call(
        partial(_cosplace_kernel, hw_total=float(HW)),
        out_shape=jax.ShapeDtypeStruct((B, OUT_P), jnp.float32),
        grid_spec=pltpu.PrefetchScalarGridSpec(
            num_scalar_prefetch=0,
            grid=grid,
            in_specs=[
                pl.BlockSpec(memory_space=pltpu.MemorySpace.SMEM),       # p
                pl.BlockSpec((tb, C, thw), lambda b, h: (b, 0, h)),      # x
                pl.BlockSpec((C, OUT_P), lambda b, h: (0, 0)),           # W^T (resident)
                pl.BlockSpec((1, OUT_P), lambda b, h: (0, 0)),           # bias (resident)
            ],
            out_specs=pl.BlockSpec((tb, OUT_P), lambda b, h: (b, 0)),
            scratch_shapes=[pltpu.VMEM((tb, C), jnp.float32)],
        ),
        compiler_params=pltpu.CompilerParams(
            dimension_semantics=("parallel", "arbitrary"),
            vmem_limit_bytes=32 * 1024 * 1024,
        ),
    )(p_s, x_bchw, w_co, b_1o)

    return out_p[:, :OUT]


def _reference(x_nchw, p, fc_w, fc_b):
    """Pure-JAX reference mirroring the PyTorch forward."""
    x = x_nchw.astype(jnp.float32)
    nrm = jnp.sqrt(jnp.sum(x * x, axis=1, keepdims=True))
    x = x / jnp.maximum(nrm, 1e-12)
    xc = jnp.maximum(x, 1e-6)                                   # clamp(min=eps)
    pooled = jnp.mean(jnp.power(xc, p[0]), axis=(2, 3))          # (B, C)
    g = jnp.power(pooled, 1.0 / p[0])
    y = g @ fc_w.T + fc_b
    ynrm = jnp.sqrt(jnp.sum(y * y, axis=1, keepdims=True))
    return y / jnp.maximum(ynrm, 1e-12)


if __name__ == "__main__":
    key = jax.random.PRNGKey(0)
    k_x, k_w, k_b = jax.random.split(key, 3)

    B, C, H, W = 2, 4, 16, 16
    OUT = 32

    x = jax.random.normal(k_x, (B, C, H, W), dtype=jnp.float32)

    # deterministic parameter init (GeM p=3, PyTorch-Linear-style uniform fc)
    p = jnp.ones((1,), dtype=jnp.float32) * 3.0
    bound = 1.0 / (C ** 0.5)
    fc_w = jax.random.uniform(k_w, (OUT, C), minval=-bound, maxval=bound,
                              dtype=jnp.float32)
    fc_b = jax.random.uniform(k_b, (OUT,), minval=-bound, maxval=bound,
                              dtype=jnp.float32)

    out = cosplace_forward(x, p, fc_w, fc_b)
    out = jax.block_until_ready(out)

    ref = _reference(x, p, fc_w, fc_b)
    assert out.shape == (B, OUT), out.shape
    assert jnp.allclose(out, ref, atol=1e-4, rtol=1e-4), (
        float(jnp.max(jnp.abs(out - ref))))

    print("KERNEL_OK")
</pallas_src>

<mosaic_0001>
module attributes {stable_mosaic.version = 11 : i64} {
  func.func @_cosplace_kernel(%arg0: i32, %arg1: i32, %arg2: memref<1xf32, #tpu.memory_space<smem>>, %arg3: memref<2x4x128xf32, #tpu.memory_space<vmem>>, %arg4: memref<4x128xf32, #tpu.memory_space<vmem>>, %arg5: memref<1x128xf32, #tpu.memory_space<vmem>>, %arg6: memref<2x128xf32, #tpu.memory_space<vmem>>, %arg7: memref<2x4xf32, #tpu.memory_space<vmem>>) attributes {dimension_semantics = [#tpu.dimension_semantics<parallel>, #tpu.dimension_semantics<arbitrary>], iteration_bounds = array<i64: 1, 2>, scalar_prefetch = 0 : i64, scratch_operands = 1 : i64, tpu.core_type = #tpu.core_type<tc>, window_params = [{transform_indices = @transform_0, window_bounds = array<i64: 1>}, {transform_indices = @transform_1, window_bounds = array<i64: 2, 4, 128>}, {pipeline_mode = #tpu.pipeline_mode<synchronous>, transform_indices = @transform_2, window_bounds = array<i64: 4, 128>}, {pipeline_mode = #tpu.pipeline_mode<synchronous>, transform_indices = @transform_3, window_bounds = array<i64: 1, 128>}, {transform_indices = @transform_4, window_bounds = array<i64: 2, 128>}]} {
    %c0_i32 = arith.constant 0 : i32
    %0 = arith.cmpi eq, %arg1, %c0_i32 : i32
    %1 = arith.extui %0 : i1 to i32
    %c0_i32_0 = arith.constant 0 : i32
    %2 = arith.cmpi ne, %1, %c0_i32_0 : i32
    scf.if %2 {
      %cst_12 = arith.constant 0.000000e+00 : f32
      %26 = vector.broadcast %cst_12 : f32 to vector<2x4xf32>
      %c0_13 = arith.constant 0 : index
      %c0_14 = arith.constant 0 : index
      %27 = vector.load %arg7[%c0_13, %c0_14] : memref<2x4xf32, #tpu.memory_space<vmem>>, vector<2x4xf32>
      tpu.vector_store %arg7[%c0_13, %c0_14], %26 {strides = array<i32>} : memref<2x4xf32, #tpu.memory_space<vmem>>, vector<2x4xf32>,
    } else {
    }
    %c0 = arith.constant 0 : index
    %3 = memref.load %arg2[%c0] : memref<1xf32, #tpu.memory_space<smem>>
    %c0_1 = arith.constant 0 : index
    %c0_2 = arith.constant 0 : index
    %c0_3 = arith.constant 0 : index
    %4 = vector.load %arg3[%c0_1, %c0_2, %c0_3] : memref<2x4x128xf32, #tpu.memory_space<vmem>>, vector<2x4x128xf32>
    %5 = arith.mulf %4, %4 : vector<2x4x128xf32>
    %cst = arith.constant dense<0.000000e+00> : vector<2x128xf32>
    %6 = vector.multi_reduction <add>, %5, %cst [1] : vector<2x4x128xf32> to vector<2x128xf32>
    %7 = vector.shape_cast %6 : vector<2x128xf32> to vector<2x1x128xf32>
    %cst_4 = arith.constant 1.000000e-24 : f32
    %8 = vector.broadcast %cst_4 : f32 to vector<2x1x128xf32>
    %9 = arith.maximumf %7, %8 : vector<2x1x128xf32>
    %10 = math.rsqrt %9 : vector<2x1x128xf32>
    %11 = vector.broadcast %10 : vector<2x1x128xf32> to vector<2x4x128xf32>
    %12 = arith.mulf %4, %11 : vector<2x4x128xf32>
    %cst_5 = arith.constant 9.99999997E-7 : f32
    %13 = vector.broadcast %cst_5 : f32 to vector<2x4x128xf32>
    %14 = arith.maximumf %12, %13 : vector<2x4x128xf32>
    %c0_6 = arith.constant 0 : index
    %c0_7 = arith.constant 0 : index
    %15 = vector.load %arg7[%c0_6, %c0_7] : memref<2x4xf32, #tpu.memory_space<vmem>>, vector<2x4xf32>
    %16 = math.log %14 : vector<2x4x128xf32>
    %17 = vector.broadcast %3 : f32 to vector<2x4x128xf32>
    %18 = arith.mulf %17, %16 : vector<2x4x128xf32>
    %19 = math.exp %18 : vector<2x4x128xf32>
    %cst_8 = arith.constant dense<0.000000e+00> : vector<2x4xf32>
    %20 = vector.multi_reduction <add>, %19, %cst_8 [2] : vector<2x4x128xf32> to vector<2x4xf32>
    %21 = arith.addf %15, %20 : vector<2x4xf32>
    %c0_9 = arith.constant 0 : index
    %c0_10 = arith.constant 0 : index
    %22 = vector.load %arg7[%c0_9, %c0_10] : memref<2x4xf32, #tpu.memory_space<vmem>>, vector<2x4xf32>
    tpu.vector_store %arg7[%c0_9, %c0_10], %21 {strides = array<i32>} : memref<2x4xf32, #tpu.memory_space<vmem>>, vector<2x4xf32>,
    %c1_i32 = arith.constant 1 : i32
    %23 = arith.cmpi eq, %arg1, %c1_i32 : i32
    %24 = arith.extui %23 : i1 to i32
    %c0_i32_11 = arith.constant 0 : i32
    %25 = arith.cmpi ne, %24, %c0_i32_11 : i32
    scf.if %25 {
      %c0_12 = arith.constant 0 : index
      %c0_13 = arith.constant 0 : index
      %26 = vector.load %arg7[%c0_12, %c0_13] : memref<2x4xf32, #tpu.memory_space<vmem>>, vector<2x4xf32>
      %cst_14 = arith.constant 3.906250e-03 : f32
      %27 = vector.broadcast %cst_14 : f32 to vector<2x4xf32>
      %28 = arith.mulf %26, %27 : vector<2x4xf32>
      %29 = math.log %28 : vector<2x4xf32>
      %30 = vector.broadcast %3 : f32 to vector<2x4xf32>
      %31 = arith.divf %29, %30 : vector<2x4xf32>
      %32 = math.exp %31 : vector<2x4xf32>
      %c0_15 = arith.constant 0 : index
      %c0_16 = arith.constant 0 : index
      %33 = vector.load %arg4[%c0_15, %c0_16] : memref<4x128xf32, #tpu.memory_space<vmem>>, vector<4x128xf32>
      %cst_17 = arith.constant dense<0.000000e+00> : vector<2x128xf32>
      %34 = tpu.matmul %32, %33, %cst_17 {dimension_numbers = #tpu.dot_dimension_numbers<[1], [0], [0], [1], [0, 0, 1, 1], [], []>} : vector<2x4xf32>, vector<4x128xf32>, vector<2x128xf32> -> vector<2x128xf32>
      %c0_18 = arith.constant 0 : index
      %c0_19 = arith.constant 0 : index
      %35 = vector.load %arg5[%c0_18, %c0_19] : memref<1x128xf32, #tpu.memory_space<vmem>>, vector<1x128xf32>
      %36 = vector.broadcast %35 : vector<1x128xf32> to vector<2x128xf32>
      %37 = arith.addf %34, %36 : vector<2x128xf32>
      %38 = arith.mulf %37, %37 : vector<2x128xf32>
      %cst_20 = arith.constant dense<0.000000e+00> : vector<2xf32>
      %39 = vector.multi_reduction <add>, %38, %cst_20 [1] : vector<2x128xf32> to vector<2xf32>
      %40 = vector.shape_cast %39 : vector<2xf32> to vector<2x1xf32>
      %cst_21 = arith.constant 1.000000e-24 : f32
      %41 = vector.broadcast %cst_21 : f32 to vector<2x1xf32>
      %42 = arith.maximumf %40, %41 : vector<2x1xf32>
      %43 = math.rsqrt %42 : vector<2x1xf32>
      %44 = vector.broadcast %43 : vector<2x1xf32> to vector<2x128xf32>
      %45 = arith.mulf %37, %44 : vector<2x128xf32>
      %c0_22 = arith.constant 0 : index
      %c0_23 = arith.constant 0 : index
      %46 = vector.load %arg6[%c0_22, %c0_23] : memref<2x128xf32, #tpu.memory_space<vmem>>, vector<2x128xf32>
      tpu.vector_store %arg6[%c0_22, %c0_23], %45 {strides = array<i32>} : memref<2x128xf32, #tpu.memory_space<vmem>>, vector<2x128xf32>,
    } else {
    }
    return
  }
  func.func @transform_0(%arg0: i32, %arg1: i32) -> i32 {
    %c0_i32 = arith.constant 0 : i32
    %c0_i32_0 = arith.constant 0 : i32
    return %c0_i32 : i32
  }
  func.func @transform_1(%arg0: i32, %arg1: i32) -> (i32, i32, i32) {
    %c0_i32 = arith.constant 0 : i32
    %c0_i32_0 = arith.constant 0 : i32
    return %arg0, %c0_i32, %arg1 : i32, i32, i32
  }
  func.func @transform_2(%arg0: i32, %arg1: i32) -> (i32, i32) {
    %c0_i32 = arith.constant 0 : i32
    %c0_i32_0 = arith.constant 0 : i32
    %c0_i32_1 = arith.constant 0 : i32
    return %c0_i32, %c0_i32_0 : i32, i32
  }
  func.func @transform_3(%arg0: i32, %arg1: i32) -> (i32, i32) {
    %c0_i32 = arith.constant 0 : i32
    %c0_i32_0 = arith.constant 0 : i32
    %c0_i32_1 = arith.constant 0 : i32
    return %c0_i32, %c0_i32_0 : i32, i32
  }
  func.func @transform_4(%arg0: i32, %arg1: i32) -> (i32, i32) {
    %c0_i32 = arith.constant 0 : i32
    %c0_i32_0 = arith.constant 0 : i32
    return %arg0, %c0_i32 : i32, i32
  }
}

</mosaic_0001>

<bundles_post_ra>
// kernel: tpu_custom_call.1
= control target key start
LH: loop header
LB: loop body
LE: loop exit
PB: predicated region body
PF: predicated region fallthrough
CT: control target
= control target key end

     0   :  { %s898_s0 = inlined_call_operand.<no memory space> [shape: f32[1], index: 0, kind: input, shape index: {}]   ;;  %s899_s1 = inlined_call_operand.hbm [shape: f32[2,4,256], index: 1, kind: input, shape index: {}]   ;;  %s900_s2 = inlined_call_operand.vmem [shape: f32[4,128], index: 2, kind: input, shape index: {}]   ;;  %s901_s3 = inlined_call_operand.vmem [shape: f32[1,128], index: 3, kind: input, shape index: {}]   ;;  %s902_s4 = inlined_call_operand.hbm [shape: f32[2,128], index: 4, kind: output, shape index: {}]  }
   0x1   :  { %9 = sst [smem:[#allocation3]] %s898_s0 }
   0x2   :  { %10 = vsyncpa [#allocation5], 0 }
   0x3   :  { %12 = vsyncpa [#allocation5 + $0x1], 0 }
   0x4   :  { %13 = vsyncpa [#allocation6], 0  ;;  %s734_s17 = smov 0   ;;  %s736_s18 = smov 0  }
   0x5   :  { %s738_s19 = smov 0   ;;  %s740_s20 = smov 0  }
   0x6   :  { %s742_s21 = smov 0   ;;  %s744_s22 = smov 0  }
   0x7 LB: > { %s475_s0 = sadd.s32 4294967295, %s696_s22   ;;  %s28_s23 = sadd.s32 1, %s692_s21  ;;  %s696_s22 = sphi %s744_s22, %s19_s22   ;;  %s692_s21 = sphi %s742_s21, %s912_s21   ;;  %s688_s20 = sphi %s740_s20, %s911_s20   ;;  %s684_s19 = sphi %s738_s19, %s910_s19   ;;  %s680_s18 = sphi %s736_s18, %s909_s18   ;;  %s676_s17 = sphi %s734_s17, %s908_s17  }
   0x8   : > { %p29_p0 = scmp.ge.s32.totalorder %s28_s23, 2  ;;  %s61_s24 = sadd.s32 1, %s684_s19 }
   0x9   : > { %p68_p1 = scmp.ne.s32.totalorder %s684_s19, %s680_s18  ;;  %p69_p2 = scmp.eq.s32.totalorder %s696_s22, 0 }
   0xa   : > { %s914_s23 = smov (%p29_p0, %s28_s23), 0  ;;  %p74_p4 = scmp.ne.s32.totalorder %s680_s18, %s676_s17 }
   0xb   : > { %p770_p3 = por %p69_p2, %p68_p1  ;;  %s57_s26 = ssub.s32 %s692_s21, %s914_s23 }
   0xc   : > { %p75_p5 = scmp.eq.s32.totalorder %s475_s0, 0  ;;  %p59_p6 = scmp.eq.s32.totalorder %s57_s26, 0 }
   0xd   : > { %p508_p8 = scmp.lt.s32.totalorder %s696_s22, 2  ;;  %s175_s29 = sand.u32 1, %s684_s19  }
   0xe   : > { %p779_p7 = por %p75_p5, %p74_p4  ;;  %s479_s30 = sshll.u32 %s692_s21, 6 }
   0xf   : > { %s785_s28 = scalar_select %p59_p6, %s684_s19, %s61_s24  }
  0x10   : > { %s478_s5 = sshll.u32 %s175_s29, 3  ;;  %s792_s8 = scalar_lea.hbm %s899_s1, %s479_s30 }
  0x11   : > { %s179_s9 = scalar_lea.vmem [#allocation4], %s478_s5  ;;  %p796_p9 = pnand %p508_p8, %p770_p3 }
  0x12   : > { %s188_s10 = sshll.u32 %s179_s9, 4  ;;  %s803_s12 = scalar_lea.sflag [#allocation5], %s175_s29  ;;  %s800_s10 = int_to_ptr.vmem [resolvable:$true] %s188_s10 }
  0x13   : > { %s586_s13 = scalar_lea.hbm %s792_s8, 128  ;;  %p588_p12 = pneg %p796_p9 }
  0x14   : > { %p587_p11 = scmp.ne.s32.totalorder %s792_s8, %s586_s13  ;;  %s591_s16 = scalar_lea.hbm %s899_s1, 256 }
  0x15   : > { %p592_p1 = scmp.lt.u32.totalorder %s792_s8, %s899_s1  ;;  %p593_p2 = scmp.lt.u32.totalorder %s591_s16, %s586_s13 }
  0x16   : > { %p589_p13 = pnand %p588_p12, %p587_p11  ;;  %p595_p4 = scmp.lt.u32.totalorder %s586_s13, %s792_s8 }
  0x17   : > { %p594_p3 = por %p593_p2, %p592_p1 }
  0x18   : > { %p590_p0 = pneg %p589_p13 }
  0x19   : > { %p596_p5 = por %p595_p4, %p594_p3 }
  0x1b   : > { %p597_p6 = pnand %p596_p5, %p590_p0 }
  0x1d   : > { %600 = shalt.err (!%p597_p6)
}
  0x1e   : > { %s601_s25 = scalar_lea.vmem %s800_s10, 128  ;;  %s698_s26 = smov [#allocation4]  }
  0x1f   : > { %p602_p8 = scmp.ne.s32.totalorder %s800_s10, %s601_s25  ;;  %s606_s29 = sshll.u32 %s698_s26, 4  ;;  %s607_s29 = int_to_ptr.vmem [resolvable:$false] %s606_s29 }
  0x20   : > { %s608_s30 = scalar_lea.vmem %s607_s29, 256  ;;  %p609_p10 = scmp.lt.s32.totalorder %s800_s10, %s607_s29 }
  0x21   : > { %p604_p11 = pnand %p602_p8, %p588_p12  ;;  %p610_p1 = scmp.lt.s32.totalorder %s608_s30, %s601_s25 }
  0x23   : > { %p605_p13 = pneg %p604_p11  ;;  %p611_p2 = por %p610_p1, %p609_p10 }
  0x25   : > { %p612_p3 = pnand %p611_p2, %p605_p13 }
  0x27   : > { %615 = shalt.err (!%p612_p3)
}
  0x28   : > { %s699_s5 = smov 128   ;;  %s700_s6 = smov 64  }
  0x29   : > { %s701_s7 = smov 4   ;;  %p196_p12 = scmp.lt.s32.totalorder %s696_s22, 3 }
  0x2a   : > { %507 = dma.hbm_to_vmem [thread:$0]  (!%p796_p9), %s792_s8, 128, %s800_s10, %s803_s12, %s699_s5, %s700_s6, %s701_s7  }
  0x2b   : > { %p906_p0 = scmp.ge.s32.totalorder %s696_s22, 1 }
  0x2d   : > { %p197_p4 = pnand %p906_p0, %p196_p12 }
  0x2e   : > { %s202_s9 = sand.u32 (!%p197_p4), 1, %s680_s18  }
  0x2f   : > { %200 = sbr.rel (%p197_p4) target bundleno = 715 (0x2cb), region = 36  ;;  %s481_s13 = sshll.u32 (!%p197_p4), %s202_s9, 3 }
  0x30   : > { %s203_s14 = scalar_lea.sflag (!%p197_p4), [#allocation5], %s202_s9  ;;  %s206_s15 = scalar_lea.vmem (!%p197_p4), [#allocation4], %s481_s13 }
  0x36   : > { %667 = dma.done.wait (%p779_p7), %s203_s14, 128  }
  0x37   : > { %669 = vsyncadd (%p779_p7), %s203_s14, 4294967168  ;;  %p482_p10 = scmp.ne.s32.totalorder %s688_s20, 0 }
  0x38   : > { %vm231_vm0 = vcmask (!%p482_p10), 25600   ;;  %v702_v0 = vmov (!%p482_p10), 0.0  }
  0x39   : > { %230 = sbr.rel (%p482_p10) target bundleno = 64 (0x40), region = 44  ;;  %232 = vst.msk [vmem:[#allocation2] sm:$0x3] (!%p482_p10), %vm231_vm0, %v702_v0 }
  0x40 PF: > { %v234_v1 = vld [vmem:[%s206_s15] sm:$0xf]  ;;  %v235_v2 = vld [vmem:[%s206_s15 + $0x4] sm:$0xf]  ;;  %vm238_vm1 = vcmask 1043456   ;;  %s233_s27 = sld [smem:[#allocation3]]  ;;  %v281_v40 = vlaneseq }
  0x41   : > { %v236_v3 = vmul.f32 %v234_v1, %v234_v1  ;;  %v237_v4 = vmul.f32 %v235_v2, %v235_v2  ;;  %vm291_vm2 = vcmask 1041409   ;;  %v261_v47 = vld [vmem:[#allocation2] sm:$0x3]  ;;  %vm295_vm3 = vcmask 25600   ;;  %p483_p7 = scmp.ne.s32.totalorder %s688_s20, 1 }
  0x42   : > { %v282_v41 = vand.u32 127, %v281_v40  ;;  %v284_v42 = vshrl.u32 %v281_v40, 7  ;;  %v309_v51 = vld [vmem:[%s900_s2] sm:$0xf] (!%p483_p7)  ;;  %v703_v53 = vmov (!%p483_p7), 0.0   ;;  %vm704_vm4 = vmmov (!%p483_p7), 0  }
  0x43   : > { %v239_v5 = vsel %vm238_vm1, %v236_v3, 0.0  ;;  %v246_v6 = vsel %vm238_vm1, %v237_v4, 0.0  ;;  %493 = vmatprep.subr.mxu0 (!%p483_p7), %v703_v53  ;;  %495 = vmatprep.mubr.msk.f32.mxu0 (!%p483_p7), %vm704_vm4, %v703_v53  ;;  %vm317_vm5 = vcmask (!%p483_p7), 31744   ;;  %v484_v61 = vld [vmem:[%s901_s3] ss:$0 sm:$0xff] (!%p483_p7)  ;;  %vm395_vm6 = vcmask (!%p483_p7), 1041408  }
  0x44   : > { %v240_v7 = vrot.slane %v239_v5, 4  ;;  %v247_v8 = vrot.slane %v246_v6, 4  ;;  %v285_v44 = vsub.s32 %v282_v41, %v284_v42  ;;  %494 = vmatpush3.msk.msra.mxu0 (!%p483_p7), %vm238_vm1, %v309_v51 }
  0x46   : > { %v241_v9 = vadd.f32 %v240_v7, %v239_v5  ;;  %v248_v10 = vadd.f32 %v247_v8, %v246_v6  ;;  %v266_v28 = vstv %s233_s27 }
  0x48   : > { %v242_v11 = vrot.slane %v241_v9, 2  ;;  %v249_v12 = vrot.slane %v248_v10, 2 }
  0x4a   : > { %v243_v13 = vadd.f32 %v242_v11, %v241_v9  ;;  %v250_v14 = vadd.f32 %v249_v12, %v248_v10 }
  0x4c   : > { %v244_v15 = vrot.slane %v243_v13, 1  ;;  %v251_v16 = vrot.slane %v250_v14, 1 }
  0x4e   : > { %v245_v17 = vadd.f32 %v244_v15, %v243_v13  ;;  %v252_v18 = vadd.f32 %v251_v16, %v250_v14 }
  0x50   : > { %v253_v19 = vmax.f32 %v245_v17, 1e-24  ;;  %v254_v20 = vmax.f32 %v252_v18, 1e-24 }
  0x52   : > { %566 = vrsqrt.f32 %v253_v19 }
  0x53   : > { %568 = vrsqrt.f32 %v254_v20 }
  0x5c   : > { %v567_v21 = vpop.eup %566 }
  0x5d   : > { %v569_v22 = vpop.eup %568  ;;  %v257_v23 = vmul.f32 %v567_v21, %v234_v1 }
  0x5e   : > { %v258_v24 = vmul.f32 %v569_v22, %v235_v2 }
  0x5f   : > { %v259_v25 = vmax.f32 %v257_v23, 1e-06 }
  0x60   : > { %v260_v26 = vmax.f32 %v258_v24, 1e-06 }
  0x61   : > { %570 = vlog2.f32 %v259_v25 }
  0x62   : > { %572 = vlog2.f32 %v260_v26 }
  0x6b   : > { %v571_v27 = vpop.eup %570 }
  0x6c   : > { %v573_v29 = vpop.eup %572  ;;  %v263_v30 = vmul.f32 0.6931472, %v571_v27 }
  0x6d   : > { %v265_v31 = vmul.f32 0.6931472, %v573_v29 }
  0x6e   : > { %v267_v32 = vmul.f32 %v266_v28, %v263_v30 }
  0x6f   : > { %v268_v33 = vmul.f32 %v266_v28, %v265_v31 }
  0x70   : > { %v269_v34 = vmul.f32 1.442695, %v267_v32 }
  0x71   : > { %v271_v35 = vmul.f32 1.442695, %v268_v33 }
  0x72   : > { %574 = vpow2.f32 %v269_v34 }
  0x73   : > { %576 = vpow2.f32 %v271_v35 }
  0x74   : > { %578 = vrcp.f32 (!%p483_p7), %v266_v28 }
  0x7c   : > { %v575_v36 = vpop.eup %574 }
  0x7d   : > { %v577_v37 = vpop.eup %576  ;;  %v273_v38 = vsel %vm238_vm1, %v575_v36, 0.0 }
  0x7e   : > { %274 = vadd.xlane.f32.xlu0 %v273_v38  ;;  %v276_v39 = vsel %vm238_vm1, %v577_v37, 0.0  ;;  %v579_v55 = vpop.eup (!%p483_p7), %578 }
  0x82   : > { %277 = vadd.xlane.f32.xlu0 %v276_v39 }
 0x10b   : > { %v275_v43 = vpop.xlane.xlu0 %274 }
 0x10c   : > { %v286_v46 = vrot.slane %v275_v43, %v285_v44 }
 0x10f   : > { %v278_v45 = vpop.xlane.xlu0 %277  ;;  %300 = sbr.rel (%p483_p7) target bundleno = 690 (0x2b2), region = 48 }
 0x110   : > { %v290_v48 = vrot.slane %v278_v45, %v285_v44 }
 0x112   : > { %v292_v49 = vsel %vm291_vm2, %v290_v48, %v286_v46 }
 0x113   : > { %v294_v50 = vadd.f32 %v292_v49, %v261_v47 }
 0x115   : > { %296 = vst.msk [vmem:[#allocation2] sm:$0x3] %vm295_vm3, %v294_v50 }
 0x11c   : > { %v301_v52 = vld [vmem:[#allocation2] sm:$0x3] }
 0x11d   : > { %v302_v54 = vmul.f32 0.00390625, %v301_v52 }
 0x11f   : > { %580 = vlog2.f32 %v302_v54 }
 0x129   : > { %v581_v56 = vpop.eup %580 }
 0x12a   : > { %v304_v57 = vmul.f32 0.6931472, %v581_v56 }
 0x12c   : > { %v306_v58 = vmul.f32 %v579_v55, %v304_v57 }
 0x12e   : > { %v307_v59 = vmul.f32 1.442695, %v306_v58 }
 0x130   : > { %582 = vpow2.f32 %v307_v59 }
 0x13a   : > { %v583_v60 = vpop.eup %582 }
 0x13b   : > { %496 = vmatmul.mubr.msk.f32.vlgmr.msra.gmra.mrb[0].mxu0 %vm317_vm5, %v583_v60 }
 0x20e   : > { %v390_v62 = vpop.f32.mrb[0].mxu0 }
 0x20f   : > { %v391_v63 = vadd.f32 %v484_v61, %v390_v62  ;;  %v497_v0 = vpop.f32.mrb[1].mxu0 }
 0x211   : > { %v394_v1 = vmul.f32 %v391_v63, %v391_v63 }
 0x213   : > { %v396_v2 = vsel %vm395_vm6, %v394_v1, 0.0 }
 0x214   : > { %397 = vadd.xlane.f32.xlu0 %v396_v2 }
 0x2a1   : > { %v398_v3 = vpop.xlane.xlu0 %397 }
 0x2a2   : > { %v399_v4 = vmax.f32 %v398_v3, 1e-24 }
 0x2a4   : > { %584 = vrsqrt.f32 %v399_v4 }
 0x2ae   : > { %v585_v5 = vpop.eup %584 }
 0x2af   : > { %v401_v6 = vmul.f32 %v585_v5, %v391_v63 }
 0x2b1   : > { %402 = vst [vmem:[#allocation7] sm:$0x3] %v401_v6 }
 0x2b2 PF: > { %p854_p9 = scmp.eq.s32.totalorder %s475_s0, 1  ;;  %s705_s16 = smov [#allocation7]  }
 0x2b3   : > { %s412_s17 = sshll.u32 %s705_s16, 4  ;;  %s413_s17 = int_to_ptr.vmem [resolvable:$true] %s412_s17 }
 0x2b4   : > { %s616_s24 = scalar_lea.vmem %s413_s17, 32  ;;  %p623_p11 = scmp.lt.s32.totalorder %s413_s17, %s413_s17 }
 0x2b5   : > { %p617_p5 = scmp.ne.s32.totalorder %s413_s17, %s616_s24  ;;  %p624_p13 = scmp.lt.s32.totalorder %s616_s24, %s616_s24 }
 0x2b7   : > { %p618_p6 = pnand %p617_p5, %p854_p9  ;;  %p625_p1 = por %p624_p13, %p623_p11 }
 0x2b9   : > { %p619_p8 = pneg %p618_p6 }
 0x2bb   : > { %p626_p2 = pnand %p625_p1, %p619_p8 }
 0x2bd   : > { %629 = shalt.err (!%p626_p2)
}
 0x2be   : > { %s630_s0 = scalar_lea.hbm %s902_s4, 32 }
 0x2bf   : > { %p631_p3 = scmp.ne.s32.totalorder %s902_s4, %s630_s0  ;;  %p636_p4 = scmp.lt.u32.totalorder %s630_s0, %s902_s4 }
 0x2c1   : > { %p632_p12 = pnand %p631_p3, %p854_p9 }
 0x2c3   : > { %p633_p0 = pneg %p632_p12 }
 0x2c5   : > { %p638_p10 = pnand %p636_p4, %p633_p0 }
 0x2c7   : > { %641 = shalt.err (!%p638_p10)
}
 0x2c8   : > { %501 = dma.vmem_to_hbm [thread:$0]  (%p854_p9), %s413_s17, 32, %s902_s4, [#allocation6]  }
 0x2c9   : > { %671 = dma.done.wait (%p854_p9), [#allocation6], 32  }
 0x2ca   : > { %673 = vsyncadd (%p854_p9), [#allocation6], 4294967264 }
 0x2cb PF: > { %s19_s22 = sadd.s32 1, %s696_s22   ;;  %s908_s17 = smov %s680_s18 }
 0x2cc   : > { %p16_p7 = scmp.ge.s32.totalorder %s19_s22, 4   ;;  %s909_s18 = smov %s684_s19 }
 0x2cd   : > { %s910_s19 = smov %s785_s28  ;;  %s911_s20 = smov %s692_s21 }
 0x2ce   : > { %s912_s21 = smov %s914_s23  ;;  %18 = sbr.rel (!%p16_p7) target bundleno = 7 (0x7), region = 82 }
 0x2d5   :  { %425 = vsyncpa [#allocation5], 1 }
 0x2d6   :  { %427 = vsyncpa [#allocation5 + $0x1], 1 }
 0x2d7   :  { %428 = vsyncpa [#allocation6], 1 }
 0x2d8   :  { %430 = vsyncpa [#allocation6 + $0x1], 1 }

</bundles_post_ra>
